<compile_context>
chip_gen: v6e
topology: v6e:2x2x1
jax: 0.10.0
libtpu: 0.0.40
codegen_flags: <defaults>
</compile_context>

<pallas_src>
import jax
import jax.numpy as jnp
import numpy as np
from jax import lax
from jax.experimental import pallas as pl
from jax.experimental.pallas import tpu as pltpu

EPS = 1e-5  # torch.nn.LayerNorm default


def _layernorm_1pass(x, gamma, beta):
    """Single-pass LayerNorm over the last (lane) axis; x is f32."""
    mu = jnp.mean(x, axis=-1, keepdims=True)
    ex2 = jnp.mean(x * x, axis=-1, keepdims=True)
    var = jnp.maximum(ex2 - mu * mu, 0.0)
    return (x - mu) * lax.rsqrt(var + EPS) * gamma + beta


def m_update_kernel(m_ref, seqs_ref, w_ref, b_ref,
                    gm_ref, bm_ref, gs_ref, bs_ref, out_ref):
    m = m_ref[...].astype(jnp.float32)
    ln_m = _layernorm_1pass(m, gm_ref[...], bm_ref[...])
    s = jnp.dot(seqs_ref[...].astype(jnp.float32), w_ref[...],
                preferred_element_type=jnp.float32) + b_ref[...]
    ln_s = _layernorm_1pass(s, gs_ref[...], bs_ref[...])
    out_ref[...] = (ln_m + ln_s).astype(out_ref.dtype)


def z_update_kernel(z_ref, gz_ref, bz_ref, out_ref):
    # Plain per-row LayerNorm (used when the channel dim is already lane-dense).
    x = z_ref[...].astype(jnp.float32)
    out_ref[...] = _layernorm_1pass(x, gz_ref[...], bz_ref[...]).astype(out_ref.dtype)


def z_update_packed_kernel(z_ref, gz_ref, bz_ref, seg_ref, out_ref):
    # z_ref: [tr, P*C] -- P consecutive logical rows packed along the lane axis.
    # seg_ref: [P*C, P*C] block-diagonal matrix with 1/C inside each row's own
    # C-lane segment.  Per-segment mean / E[x^2] ride the (otherwise idle) MXU.
    x = z_ref[...].astype(jnp.float32)
    s = seg_ref[...]
    mu = jnp.dot(x, s, preferred_element_type=jnp.float32)
    ex2 = jnp.dot(x * x, s, preferred_element_type=jnp.float32)
    var = jnp.maximum(ex2 - mu * mu, 0.0)
    out_ref[...] = ((x - mu) * lax.rsqrt(var + EPS) * gz_ref[...]
                    + bz_ref[...]).astype(out_ref.dtype)


def _pick_row_tile(rows, lane_width, itemsize, *, target_block_bytes=2 << 20):
    """Rows per z block: large enough to amortize per-grid-step overhead,
    small enough that double-buffered in+out plus f32 temporaries stay well
    inside the scoped-VMEM budget on v5e/v6e/v7x; capped at rows//2 so both
    v7x TensorCores get work."""
    if rows < 8:
        return rows
    tr = max(8, (target_block_bytes // (lane_width * itemsize)) // 8 * 8)
    half = (rows // 2) // 8 * 8
    if half >= 8:
        tr = min(tr, half)
    return min(tr, rows)


def inverse_recycling_embedder(m, z, seqs, params, *, target_block_bytes=2 << 20):
    """m: [B, N, C_m], z: [B, N, N, C_z], seqs: [B, N, no_seq]."""
    B, N, C_m = m.shape
    C_z = z.shape[-1]
    no_seq = seqs.shape[-1]

    f32 = lambda v: jnp.asarray(v, jnp.float32)
    rowvec = lambda v: f32(v).reshape(1, -1)

    m2 = m.reshape(B * N, C_m)
    seqs2 = seqs.reshape(B * N, no_seq)

    # ---- m_update: tiny (B*N rows) -> single-block kernel ----
    m_out = pl.pallas_call(
        m_update_kernel,
        out_shape=jax.ShapeDtypeStruct((B * N, C_m), m.dtype),
        grid_spec=pltpu.PrefetchScalarGridSpec(
            num_scalar_prefetch=0,
            grid=(1,),
            in_specs=[
                pl.BlockSpec((B * N, C_m), lambda i: (0, 0)),
                pl.BlockSpec((B * N, no_seq), lambda i: (0, 0)),
                pl.BlockSpec((no_seq, C_m), lambda i: (0, 0)),
            ] + [pl.BlockSpec((1, C_m), lambda i: (0, 0)) for _ in range(5)],
            out_specs=pl.BlockSpec((B * N, C_m), lambda i: (0, 0)),
        ),
    )(m2, seqs2, f32(params["w_seqs"]), rowvec(params["b_seqs"]),
      rowvec(params["gamma_m"]), rowvec(params["beta_m"]),
      rowvec(params["gamma_seqs"]), rowvec(params["beta_seqs"]))

    # ---- z_update: streaming LayerNorm over B*N*N rows ----
    rows = B * N * N

    # Lane-dense packing factor: P consecutive rows' channels along the lanes.
    P = 1
    if C_z < 128 and 128 % C_z == 0:
        P = 128 // C_z
        while P > 1 and rows % P:   # P is a power of 2; fall back until it divides
            P //= 2
    lanes = P * C_z
    rows_p = rows // P

    z2 = z.reshape(rows_p, lanes)                       # pure metadata reshape
    gz = jnp.tile(f32(params["gamma_z"]), P).reshape(1, lanes)
    bz = jnp.tile(f32(params["beta_z"]), P).reshape(1, lanes)

    itemsize = jnp.dtype(z.dtype).itemsize
    tr = _pick_row_tile(rows_p, lanes, itemsize,
                        target_block_bytes=target_block_bytes)
    grid = (pl.cdiv(rows_p, tr),)   # last block may be padded; OOB stores dropped

    if P > 1:
        seg = jnp.arange(lanes) // C_z
        seg_mat = (seg[:, None] == seg[None, :]).astype(jnp.float32) / C_z
        kernel = z_update_packed_kernel
        extra_args = (seg_mat,)
        extra_specs = [pl.BlockSpec((lanes, lanes), lambda i: (0, 0))]
    else:
        kernel = z_update_kernel
        extra_args = ()
        extra_specs = []

    z_out = pl.pallas_call(
        kernel,
        out_shape=jax.ShapeDtypeStruct((rows_p, lanes), z.dtype),
        grid_spec=pltpu.PrefetchScalarGridSpec(
            num_scalar_prefetch=0,
            grid=grid,
            in_specs=[
                pl.BlockSpec((tr, lanes), lambda i: (i, 0)),
                pl.BlockSpec((1, lanes), lambda i: (0, 0)),
                pl.BlockSpec((1, lanes), lambda i: (0, 0)),
            ] + extra_specs,
            out_specs=pl.BlockSpec((tr, lanes), lambda i: (i, 0)),
        ),
        compiler_params=pltpu.CompilerParams(
            dimension_semantics=("parallel",),
            vmem_limit_bytes=32 * 1024 * 1024),
    )(z2, gz, bz, *extra_args)

    return m_out.reshape(B, N, C_m), z_out.reshape(B, N, N, C_z)


def _reference(m, z, seqs, params):
    def ln(x, g, b):
        x = x.astype(jnp.float32)
        mu = jnp.mean(x, axis=-1, keepdims=True)
        var = jnp.mean((x - mu) ** 2, axis=-1, keepdims=True)
        return (x - mu) * lax.rsqrt(var + EPS) * g + b

    m_upd = ln(m, params["gamma_m"], params["beta_m"]) + ln(
        jnp.einsum("bns,sc->bnc", seqs.astype(jnp.float32), params["w_seqs"])
        + params["b_seqs"],
        params["gamma_seqs"], params["beta_seqs"])
    z_upd = ln(z, params["gamma_z"], params["beta_z"])
    return m_upd.astype(m.dtype), z_upd.astype(z.dtype)


if __name__ == "__main__":
    # Module hyper-params (track_seq_states=True so the Linear hot path exists).
    C_m, C_z, NO_SEQ = 32, 32, 21
    B, N = 2, 8

    k = iter(jax.random.split(jax.random.PRNGKey(0), 16))

    m = jax.random.normal(next(k), (B, N, C_m), dtype=jnp.float32)
    z = jax.random.normal(next(k), (B, N, N, C_z), dtype=jnp.float32)
    seqs = jax.random.normal(next(k), (B, N, NO_SEQ), dtype=jnp.float32)

    params = {
        # Linear(21, c_m): weight stored as [in, out] so kernel does seqs @ W.
        "w_seqs": 0.1 * jax.random.normal(next(k), (NO_SEQ, C_m), jnp.float32),
        "b_seqs": 0.1 * jax.random.normal(next(k), (C_m,), jnp.float32),
        # LayerNorm(c_m)
        "gamma_m": 1.0 + 0.1 * jax.random.normal(next(k), (C_m,), jnp.float32),
        "beta_m": 0.1 * jax.random.normal(next(k), (C_m,), jnp.float32),
        # LayerNorm(c_z)
        "gamma_z": 1.0 + 0.1 * jax.random.normal(next(k), (C_z,), jnp.float32),
        "beta_z": 0.1 * jax.random.normal(next(k), (C_z,), jnp.float32),
        # LayerNorm(c_m) for the seq branch
        "gamma_seqs": 1.0 + 0.1 * jax.random.normal(next(k), (C_m,), jnp.float32),
        "beta_seqs": 0.1 * jax.random.normal(next(k), (C_m,), jnp.float32),
    }

    m_upd, z_upd = inverse_recycling_embedder(m, z, seqs, params)
    jax.block_until_ready((m_upd, z_upd))

    m_ref, z_ref = _reference(m, z, seqs, params)
    np.testing.assert_allclose(np.asarray(m_upd), np.asarray(m_ref),
                               rtol=1e-4, atol=1e-4)
    np.testing.assert_allclose(np.asarray(z_upd), np.asarray(z_ref),
                               rtol=1e-4, atol=1e-4)
    print("KERNEL_OK")
</pallas_src>

<mosaic_0001>
module attributes {stable_mosaic.version = 11 : i64} {
  func.func @m_update_kernel(%arg0: i32, %arg1: memref<16x32xf32, #tpu.memory_space<vmem>>, %arg2: memref<16x21xf32, #tpu.memory_space<vmem>>, %arg3: memref<21x32xf32, #tpu.memory_space<vmem>>, %arg4: memref<1x32xf32, #tpu.memory_space<vmem>>, %arg5: memref<1x32xf32, #tpu.memory_space<vmem>>, %arg6: memref<1x32xf32, #tpu.memory_space<vmem>>, %arg7: memref<1x32xf32, #tpu.memory_space<vmem>>, %arg8: memref<1x32xf32, #tpu.memory_space<vmem>>, %arg9: memref<16x32xf32, #tpu.memory_space<vmem>>) attributes {dimension_semantics = [#tpu.dimension_semantics<arbitrary>], iteration_bounds = array<i64: 1>, scalar_prefetch = 0 : i64, scratch_operands = 0 : i64, tpu.core_type = #tpu.core_type<tc>, window_params = [{pipeline_mode = #tpu.pipeline_mode<synchronous>, transform_indices = @transform_0, window_bounds = array<i64: 16, 32>}, {pipeline_mode = #tpu.pipeline_mode<synchronous>, transform_indices = @transform_1, window_bounds = array<i64: 16, 21>}, {pipeline_mode = #tpu.pipeline_mode<synchronous>, transform_indices = @transform_2, window_bounds = array<i64: 21, 32>}, {pipeline_mode = #tpu.pipeline_mode<synchronous>, transform_indices = @transform_3, window_bounds = array<i64: 1, 32>}, {pipeline_mode = #tpu.pipeline_mode<synchronous>, transform_indices = @transform_4, window_bounds = array<i64: 1, 32>}, {pipeline_mode = #tpu.pipeline_mode<synchronous>, transform_indices = @transform_5, window_bounds = array<i64: 1, 32>}, {pipeline_mode = #tpu.pipeline_mode<synchronous>, transform_indices = @transform_6, window_bounds = array<i64: 1, 32>}, {pipeline_mode = #tpu.pipeline_mode<synchronous>, transform_indices = @transform_7, window_bounds = array<i64: 1, 32>}, {pipeline_mode = #tpu.pipeline_mode<synchronous>, transform_indices = @transform_8, window_bounds = array<i64: 16, 32>}]} {
    %c0 = arith.constant 0 : index
    %c0_0 = arith.constant 0 : index
    %0 = vector.load %arg1[%c0, %c0_0] : memref<16x32xf32, #tpu.memory_space<vmem>>, vector<16x32xf32>
    %c0_1 = arith.constant 0 : index
    %c0_2 = arith.constant 0 : index
    %1 = vector.load %arg5[%c0_1, %c0_2] : memref<1x32xf32, #tpu.memory_space<vmem>>, vector<1x32xf32>
    %c0_3 = arith.constant 0 : index
    %c0_4 = arith.constant 0 : index
    %2 = vector.load %arg6[%c0_3, %c0_4] : memref<1x32xf32, #tpu.memory_space<vmem>>, vector<1x32xf32>
    %cst = arith.constant dense<0.000000e+00> : vector<16xf32>
    %3 = vector.multi_reduction <add>, %0, %cst [1] : vector<16x32xf32> to vector<16xf32>
    %4 = vector.shape_cast %3 : vector<16xf32> to vector<16x1xf32>
    %cst_5 = arith.constant 3.200000e+01 : f32
    %5 = vector.broadcast %cst_5 : f32 to vector<16x1xf32>
    %6 = arith.divf %4, %5 : vector<16x1xf32>
    %7 = arith.mulf %0, %0 : vector<16x32xf32>
    %cst_6 = arith.constant dense<0.000000e+00> : vector<16xf32>
    %8 = vector.multi_reduction <add>, %7, %cst_6 [1] : vector<16x32xf32> to vector<16xf32>
    %9 = vector.shape_cast %8 : vector<16xf32> to vector<16x1xf32>
    %cst_7 = arith.constant 3.200000e+01 : f32
    %10 = vector.broadcast %cst_7 : f32 to vector<16x1xf32>
    %11 = arith.divf %9, %10 : vector<16x1xf32>
    %12 = arith.mulf %6, %6 : vector<16x1xf32>
    %13 = arith.subf %11, %12 : vector<16x1xf32>
    %cst_8 = arith.constant 0.000000e+00 : f32
    %14 = vector.broadcast %cst_8 : f32 to vector<16x1xf32>
    %15 = arith.maximumf %13, %14 : vector<16x1xf32>
    %16 = vector.broadcast %6 : vector<16x1xf32> to vector<16x32xf32>
    %17 = arith.subf %0, %16 : vector<16x32xf32>
    %cst_9 = arith.constant 9.99999974E-6 : f32
    %18 = vector.broadcast %cst_9 : f32 to vector<16x1xf32>
    %19 = arith.addf %15, %18 : vector<16x1xf32>
    %20 = math.rsqrt %19 : vector<16x1xf32>
    %21 = vector.broadcast %20 : vector<16x1xf32> to vector<16x32xf32>
    %22 = arith.mulf %17, %21 : vector<16x32xf32>
    %23 = vector.broadcast %1 : vector<1x32xf32> to vector<16x32xf32>
    %24 = arith.mulf %22, %23 : vector<16x32xf32>
    %25 = vector.broadcast %2 : vector<1x32xf32> to vector<16x32xf32>
    %26 = arith.addf %24, %25 : vector<16x32xf32>
    %c0_10 = arith.constant 0 : index
    %c0_11 = arith.constant 0 : index
    %27 = vector.load %arg2[%c0_10, %c0_11] : memref<16x21xf32, #tpu.memory_space<vmem>>, vector<16x21xf32>
    %c0_12 = arith.constant 0 : index
    %c0_13 = arith.constant 0 : index
    %28 = vector.load %arg3[%c0_12, %c0_13] : memref<21x32xf32, #tpu.memory_space<vmem>>, vector<21x32xf32>
    %cst_14 = arith.constant dense<0.000000e+00> : vector<16x32xf32>
    %29 = tpu.matmul %27, %28, %cst_14 {dimension_numbers = #tpu.dot_dimension_numbers<[1], [0], [0], [1], [0, 0, 1, 1], [], []>} : vector<16x21xf32>, vector<21x32xf32>, vector<16x32xf32> -> vector<16x32xf32>
    %c0_15 = arith.constant 0 : index
    %c0_16 = arith.constant 0 : index
    %30 = vector.load %arg4[%c0_15, %c0_16] : memref<1x32xf32, #tpu.memory_space<vmem>>, vector<1x32xf32>
    %31 = vector.broadcast %30 : vector<1x32xf32> to vector<16x32xf32>
    %32 = arith.addf %29, %31 : vector<16x32xf32>
    %c0_17 = arith.constant 0 : index
    %c0_18 = arith.constant 0 : index
    %33 = vector.load %arg7[%c0_17, %c0_18] : memref<1x32xf32, #tpu.memory_space<vmem>>, vector<1x32xf32>
    %c0_19 = arith.constant 0 : index
    %c0_20 = arith.constant 0 : index
    %34 = vector.load %arg8[%c0_19, %c0_20] : memref<1x32xf32, #tpu.memory_space<vmem>>, vector<1x32xf32>
    %cst_21 = arith.constant dense<0.000000e+00> : vector<16xf32>
    %35 = vector.multi_reduction <add>, %32, %cst_21 [1] : vector<16x32xf32> to vector<16xf32>
    %36 = vector.shape_cast %35 : vector<16xf32> to vector<16x1xf32>
    %cst_22 = arith.constant 3.200000e+01 : f32
    %37 = vector.broadcast %cst_22 : f32 to vector<16x1xf32>
    %38 = arith.divf %36, %37 : vector<16x1xf32>
    %39 = arith.mulf %32, %32 : vector<16x32xf32>
    %cst_23 = arith.constant dense<0.000000e+00> : vector<16xf32>
    %40 = vector.multi_reduction <add>, %39, %cst_23 [1] : vector<16x32xf32> to vector<16xf32>
    %41 = vector.shape_cast %40 : vector<16xf32> to vector<16x1xf32>
    %cst_24 = arith.constant 3.200000e+01 : f32
    %42 = vector.broadcast %cst_24 : f32 to vector<16x1xf32>
    %43 = arith.divf %41, %42 : vector<16x1xf32>
    %44 = arith.mulf %38, %38 : vector<16x1xf32>
    %45 = arith.subf %43, %44 : vector<16x1xf32>
    %cst_25 = arith.constant 0.000000e+00 : f32
    %46 = vector.broadcast %cst_25 : f32 to vector<16x1xf32>
    %47 = arith.maximumf %45, %46 : vector<16x1xf32>
    %48 = vector.broadcast %38 : vector<16x1xf32> to vector<16x32xf32>
    %49 = arith.subf %32, %48 : vector<16x32xf32>
    %cst_26 = arith.constant 9.99999974E-6 : f32
    %50 = vector.broadcast %cst_26 : f32 to vector<16x1xf32>
    %51 = arith.addf %47, %50 : vector<16x1xf32>
    %52 = math.rsqrt %51 : vector<16x1xf32>
    %53 = vector.broadcast %52 : vector<16x1xf32> to vector<16x32xf32>
    %54 = arith.mulf %49, %53 : vector<16x32xf32>
    %55 = vector.broadcast %33 : vector<1x32xf32> to vector<16x32xf32>
    %56 = arith.mulf %54, %55 : vector<16x32xf32>
    %57 = vector.broadcast %34 : vector<1x32xf32> to vector<16x32xf32>
    %58 = arith.addf %56, %57 : vector<16x32xf32>
    %59 = arith.addf %26, %58 : vector<16x32xf32>
    %c0_27 = arith.constant 0 : index
    %c0_28 = arith.constant 0 : index
    %60 = vector.load %arg9[%c0_27, %c0_28] : memref<16x32xf32, #tpu.memory_space<vmem>>, vector<16x32xf32>
    tpu.vector_store %arg9[%c0_27, %c0_28], %59 {strides = array<i32>} : memref<16x32xf32, #tpu.memory_space<vmem>>, vector<16x32xf32>,
    return
  }
  func.func @transform_0(%arg0: i32) -> (i32, i32) {
    %c0_i32 = arith.constant 0 : i32
    %c0_i32_0 = arith.constant 0 : i32
    %c0_i32_1 = arith.constant 0 : i32
    return %c0_i32, %c0_i32_0 : i32, i32
  }
  func.func @transform_1(%arg0: i32) -> (i32, i32) {
    %c0_i32 = arith.constant 0 : i32
    %c0_i32_0 = arith.constant 0 : i32
    %c0_i32_1 = arith.constant 0 : i32
    return %c0_i32, %c0_i32_0 : i32, i32
  }
  func.func @transform_2(%arg0: i32) -> (i32, i32) {
    %c0_i32 = arith.constant 0 : i32
    %c0_i32_0 = arith.constant 0 : i32
    %c0_i32_1 = arith.constant 0 : i32
    return %c0_i32, %c0_i32_0 : i32, i32
  }
  func.func @transform_3(%arg0: i32) -> (i32, i32) {
    %c0_i32 = arith.constant 0 : i32
    %c0_i32_0 = arith.constant 0 : i32
    %c0_i32_1 = arith.constant 0 : i32
    return %c0_i32, %c0_i32_0 : i32, i32
  }
  func.func @transform_4(%arg0: i32) -> (i32, i32) {
    %c0_i32 = arith.constant 0 : i32
    %c0_i32_0 = arith.constant 0 : i32
    %c0_i32_1 = arith.constant 0 : i32
    return %c0_i32, %c0_i32_0 : i32, i32
  }
  func.func @transform_5(%arg0: i32) -> (i32, i32) {
    %c0_i32 = arith.constant 0 : i32
    %c0_i32_0 = arith.constant 0 : i32
    %c0_i32_1 = arith.constant 0 : i32
    return %c0_i32, %c0_i32_0 : i32, i32
  }
  func.func @transform_6(%arg0: i32) -> (i32, i32) {
    %c0_i32 = arith.constant 0 : i32
    %c0_i32_0 = arith.constant 0 : i32
    %c0_i32_1 = arith.constant 0 : i32
    return %c0_i32, %c0_i32_0 : i32, i32
  }
  func.func @transform_7(%arg0: i32) -> (i32, i32) {
    %c0_i32 = arith.constant 0 : i32
    %c0_i32_0 = arith.constant 0 : i32
    %c0_i32_1 = arith.constant 0 : i32
    return %c0_i32, %c0_i32_0 : i32, i32
  }
  func.func @transform_8(%arg0: i32) -> (i32, i32) {
    %c0_i32 = arith.constant 0 : i32
    %c0_i32_0 = arith.constant 0 : i32
    %c0_i32_1 = arith.constant 0 : i32
    return %c0_i32, %c0_i32_0 : i32, i32
  }
}

</mosaic_0001>

<bundles_post_ra>
// kernel: tpu_custom_call.1
= control target key start
LH: loop header
LB: loop body
LE: loop exit
PB: predicated region body
PF: predicated region fallthrough
CT: control target
= control target key end

     0   :  { %13 = vsyncpa [#allocation3], 0  ;;  %s537_s0 = inlined_call_operand.hbm [shape: f32[16,32], index: 0, kind: input, shape index: {}]   ;;  %s538_s1 = inlined_call_operand.hbm [shape: f32[16,21], index: 1, kind: input, shape index: {}]   ;;  %s539_s2 = inlined_call_operand.hbm [shape: f32[21,32], index: 2, kind: input, shape index: {}]   ;;  %s540_s3 = inlined_call_operand.vmem [shape: f32[1,32], index: 3, kind: input, shape index: {}]   ;;  %s541_s4 = inlined_call_operand.vmem [shape: f32[1,32], index: 4, kind: input, shape index: {}]   ;;  %s542_s5 = inlined_call_operand.vmem [shape: f32[1,32], index: 5, kind: input, shape index: {}]   ;;  %s543_s6 = inlined_call_operand.vmem [shape: f32[1,32], index: 6, kind: input, shape index: {}]   ;;  %s544_s7 = inlined_call_operand.vmem [shape: f32[1,32], index: 7, kind: input, shape index: {}]   ;;  %s545_s8 = inlined_call_operand.hbm [shape: f32[16,32], index: 8, kind: output, shape index: {}]  }
   0x1   :  { %14 = vsyncpa [#allocation6], 0 }
   0x2   :  { %15 = vsyncpa [#allocation4], 0  ;;  %s417_s27 = smov [#allocation5]   ;;  %s418_s29 = smov [#allocation2]  }
   0x3   :  { %s33_s28 = sshll.u32 %s417_s27, 4  ;;  %s21_s30 = sshll.u32 %s418_s29, 4  ;;  %s34_s28 = int_to_ptr.vmem [resolvable:$true] %s33_s28  ;;  %s22_s30 = int_to_ptr.vmem [resolvable:$true] %s21_s30 }
   0x4   :  { %s339_s9 = scalar_lea.vmem %s34_s28, 256  ;;  %p344_p1 = scmp.lt.s32.totalorder %s34_s28, %s34_s28 }
   0x5   :  { %p340_p0 = scmp.ne.s32.totalorder %s34_s28, %s339_s9  ;;  %p345_p2 = scmp.lt.s32.totalorder %s339_s9, %s339_s9 }
   0x7   :  { %p346_p3 = por %p345_p2, %p344_p1 }
   0x9   :  { %p347_p4 = pnand %p346_p3, %p340_p0 }
   0xb   :  { %350 = shalt.err (!%p347_p4)
}
   0xc   :  { %s419_s10 = smov 128   ;;  %s420_s11 = smov 8  }
   0xd   :  { %39 = dma.hbm_to_vmem [thread:$0]  %s538_s1, 256, %s34_s28, [#allocation6], %s419_s10, %s419_s10, %s420_s11  }
   0xe   :  { %s359_s14 = scalar_lea.vmem %s22_s30, 256  ;;  %p364_p6 = scmp.lt.s32.totalorder %s22_s30, %s22_s30 }
   0xf   :  { %p360_p5 = scmp.ne.s32.totalorder %s22_s30, %s359_s14  ;;  %p365_p7 = scmp.lt.s32.totalorder %s359_s14, %s359_s14 }
  0x11   :  { %p366_p8 = por %p365_p7, %p364_p6 }
  0x13   :  { %p367_p9 = pnand %p366_p8, %p360_p5 }
  0x15   :  { %370 = shalt.err (!%p367_p9)
}
  0x16   :  { %27 = dma.hbm_to_vmem [thread:$0]  %s537_s0, 256, %s22_s30, [#allocation3], %s419_s10, %s419_s10, %s420_s11  }
  0x17   :  { %s421_s17 = smov [#allocation7]  }
  0x18   :  { %s45_s18 = sshll.u32 %s421_s17, 4  ;;  %s46_s18 = int_to_ptr.vmem [resolvable:$true] %s45_s18 }
  0x19   :  { %s379_s19 = scalar_lea.vmem %s46_s18, 384  ;;  %p384_p11 = scmp.lt.s32.totalorder %s46_s18, %s46_s18 }
  0x1a   :  { %p380_p10 = scmp.ne.s32.totalorder %s46_s18, %s379_s19  ;;  %p385_p12 = scmp.lt.s32.totalorder %s379_s19, %s379_s19 }
  0x1c   :  { %p386_p13 = por %p385_p12, %p384_p11 }
  0x1e   :  { %p387_p0 = pnand %p386_p13, %p380_p10 }
  0x20   :  { %390 = shalt.err (!%p387_p0)
}
  0x21   :  { %51 = dma.hbm_to_vmem [thread:$0]  %s539_s2, 384, %s46_s18, [#allocation6], %s419_s10, %s419_s10, %s420_s11  }
  0x22   :  { %411 = dma.done.wait [#allocation3], 256  }
  0x23   :  { %412 = vsyncadd [#allocation3], 4294967040 }
  0x24   :  { %413 = dma.done.wait [#allocation6], 640  }
  0x25   :  { %414 = vsyncadd [#allocation6], 4294966656  ;;  %vm144_vm0 = vcmask 1044480   ;;  %vm137_vm1 = vcmask 171008   ;;  %vm75_vm2 = vcmask 261120   ;;  %v128_v1 = vld [vmem:[#allocation7 + $0x8] sm:$0xff] }
  0x26   :  { %v129_v0 = vld [vmem:[#allocation7 + $0x10] sm:$0x1f]  ;;  %v486_v3 = vld [vmem:[#allocation2] sm:$0xff]  ;;  %v491_v6 = vld [vmem:[#allocation2 + $0x8] sm:$0xff] }
  0x27   :  { %308 = vmatprep.subr.msk.mxu0 %vm144_vm0, %v129_v0  ;;  %v125_v2 = vld [vmem:[#allocation5] sm:$0xff]  ;;  %v127_v4 = vld [vmem:[#allocation7] sm:$0xff]  ;;  %v76_v5 = vsel %vm75_vm2, %v486_v3, 0.0  ;;  %v86_v7 = vmul.f32 %v491_v6, %v491_v6  ;;  %v126_v8 = vld [vmem:[#allocation5 + $0x8] sm:$0xff]  ;;  %v79_v9 = vsel %vm75_vm2, %v491_v6, 0.0  ;;  %v85_v10 = vmul.f32 %v486_v3, %v486_v3 }
  0x28   :  { %309 = vmatpush3.msk.msra.mxu0 %vm144_vm0, %v129_v0  ;;  %314 = vmatprep.mubr.msk.f32.mxu0 %vm137_vm1, %v125_v2  ;;  %v297_v13 = vld [vmem:[%s540_s3] ss:$0 sm:$0xff] }
  0x29   :  { %310 = vmatprep.subr.mxu0 %v128_v1  ;;  %77 = vadd.xlane.f32.xlu0 %v76_v5  ;;  %v90_v11 = vsel %vm75_vm2, %v86_v7, 0.0  ;;  %v87_v12 = vsel %vm75_vm2, %v85_v10, 0.0  ;;  %v295_v61 = vld [vmem:[%s541_s4] ss:$0 sm:$0xff]  ;;  %s422_s4 = smov [#allocation8]  }
  0x2a   :  { %311 = vmatpush3.msra.mxu0 %v128_v1  ;;  %91 = vadd.xlane.f32.xlu1 %v90_v11  ;;  %v301_v1 = vld [vmem:[%s543_s6] ss:$0 sm:$0xff]  ;;  %s282_s6 = sshll.u32 %s422_s4, 4  ;;  %s283_s6 = int_to_ptr.vmem [resolvable:$true] %s282_s6 }
  0x2b   :  { %312 = vmatprep.subr.mxu0 %v127_v4  ;;  %v302_v7 = vld [vmem:[%s544_s7] ss:$0 sm:$0xff]  ;;  %p396_p2 = scmp.lt.s32.totalorder %s283_s6, %s283_s6 }
  0x2c   :  { %313 = vmatpush3.msra.mxu0 %v127_v4 }
  0x2d   :  { %315 = vmatmul.mubr.msk.f32.vlgmr.msra.gmra.mxu0 %vm137_vm1, %v126_v8  ;;  %80 = vadd.xlane.f32.xlu0 %v79_v9 }
  0x31   :  { %88 = vadd.xlane.f32.xlu0 %v87_v12 }
  0xb2   :  { %v78_v24 = vpop.xlane.xlu0 %77 }
  0xb3   :  { %v83_v26 = vmul.f32 0.03125, %v78_v24  ;;  %v92_v29 = vpop.xlane.xlu1 %91 }
  0xb4   :  { %v94_v33 = vmul.f32 0.03125, %v92_v29 }
  0xb5   :  { %v95_v30 = vmul.f32 %v83_v26, %v83_v26  ;;  %v101_v56 = vsub.f32 %v486_v3, %v83_v26 }
  0xb6   :  { %v81_v25 = vpop.xlane.xlu0 %80 }
  0xb7   :  { %v84_v28 = vmul.f32 0.03125, %v81_v25 }
  0xb9   :  { %v96_v32 = vmul.f32 %v84_v28, %v84_v28  ;;  %v102_v58 = vsub.f32 %v491_v6, %v84_v28  ;;  %v296_v6 = vld [vmem:[%s542_s5] ss:$0 sm:$0xff]  ;;  %s391_s5 = scalar_lea.vmem %s283_s6, 256 }
  0xba   :  { %v89_v27 = vpop.xlane.xlu0 %88  ;;  %p392_p1 = scmp.ne.s32.totalorder %s283_s6, %s391_s5  ;;  %p397_p3 = scmp.lt.s32.totalorder %s391_s5, %s391_s5 }
  0xbb   :  { %v93_v31 = vmul.f32 0.03125, %v89_v27  ;;  %v98_v35 = vsub.f32 %v94_v33, %v96_v32 }
  0xbc   :  { %p398_p4 = por %p397_p3, %p396_p2 }
  0xbd   :  { %v97_v34 = vsub.f32 %v93_v31, %v95_v30  ;;  %v100_v38 = vmax.f32 %v98_v35, 0.0 }
  0xbe   :  { %p399_p5 = pnand %p398_p4, %p392_p1 }
  0xbf   :  { %v99_v37 = vmax.f32 %v97_v34, 0.0  ;;  %v104_v44 = vadd.f32 1e-05, %v100_v38 }
  0xc1   :  { %v103_v41 = vadd.f32 1e-05, %v99_v37 }
  0xc3   :  { %323 = vrsqrt.f32 %v103_v41 }
  0xc4   :  { %325 = vrsqrt.f32 %v104_v44 }
  0xd0   :  { %v324_v57 = vpop.eup %323 }
  0xd1   :  { %v326_v59 = vpop.eup %325  ;;  %v107_v60 = vmul.f32 %v324_v57, %v101_v56 }
  0xd2   :  { %v108_v63 = vmul.f32 %v326_v59, %v102_v58 }
  0xd3   :  { %v115_v4 = vmul.f32 %v295_v61, %v107_v60 }
  0xd4   :  { %v116_v8 = vmul.f32 %v295_v61, %v108_v63 }
  0xd5   :  { %v123_v11 = vadd.f32 %v296_v6, %v115_v4 }
  0xed   :  { %v316_v14 = vpop.f32.mrf.mxu0 }
  0xee   :  { %v505_v15 = vadd.f32 %v316_v14, %v297_v13  ;;  %v124_v14 = vadd.f32 %v296_v6, %v116_v8 }
  0xef   :  { %v214_v16 = vpop.f32.mrf.mxu0 }
  0xf0   :  { %v215_v17 = vadd.f32 %v297_v13, %v214_v16  ;;  %v228_v18 = vsel %vm75_vm2, %v505_v15, 0.0  ;;  %v234_v22 = vmul.f32 %v505_v15, %v505_v15 }
  0xf1   :  { %229 = vadd.xlane.f32.xlu1 %v228_v18 }
  0xf2   :  { %v233_v19 = vmul.f32 %v215_v17, %v215_v17  ;;  %v225_v20 = vsel %vm75_vm2, %v215_v17, 0.0  ;;  %v238_v23 = vsel %vm75_vm2, %v234_v22, 0.0 }
  0xf4   :  { %v235_v21 = vsel %vm75_vm2, %v233_v19, 0.0 }
  0xf5   :  { %226 = vadd.xlane.f32.xlu1 %v225_v20  ;;  %236 = vadd.xlane.f32.xlu0 %v235_v21 }
  0xf9   :  { %239 = vadd.xlane.f32.xlu1 %v238_v23 }
 0x17a   :  { %v230_v36 = vpop.xlane.xlu1 %229 }
 0x17b   :  { %v232_v42 = vmul.f32 0.03125, %v230_v36 }
 0x17d   :  { %v244_v48 = vmul.f32 %v232_v42, %v232_v42  ;;  %v250_v2 = vsub.f32 %v505_v15, %v232_v42 }
 0x17e   :  { %v227_v39 = vpop.xlane.xlu1 %226  ;;  %v237_v40 = vpop.xlane.xlu0 %236 }
 0x17f   :  { %v231_v43 = vmul.f32 0.03125, %v227_v39  ;;  %v241_v46 = vmul.f32 0.03125, %v237_v40 }
 0x181   :  { %v243_v45 = vmul.f32 %v231_v43, %v231_v43  ;;  %v249_v62 = vsub.f32 %v215_v17, %v231_v43 }
 0x182   :  { %v240_v47 = vpop.xlane.xlu1 %239 }
 0x183   :  { %v245_v49 = vsub.f32 %v241_v46, %v243_v45  ;;  %v242_v50 = vmul.f32 0.03125, %v240_v47 }
 0x185   :  { %v247_v51 = vmax.f32 %v245_v49, 0.0  ;;  %v246_v52 = vsub.f32 %v242_v50, %v244_v48 }
 0x187   :  { %v251_v53 = vadd.f32 1e-05, %v247_v51  ;;  %v248_v54 = vmax.f32 %v246_v52, 0.0 }
 0x189   :  { %327 = vrsqrt.f32 %v251_v53  ;;  %v252_v55 = vadd.f32 1e-05, %v248_v54 }
 0x18b   :  { %329 = vrsqrt.f32 %v252_v55 }
 0x196   :  { %v328_v0 = vpop.eup %327 }
 0x197   :  { %v255_v3 = vmul.f32 %v328_v0, %v249_v62 }
 0x198   :  { %v330_v5 = vpop.eup %329 }
 0x199   :  { %v256_v9 = vmul.f32 %v330_v5, %v250_v2  ;;  %v263_v10 = vmul.f32 %v301_v1, %v255_v3 }
 0x19b   :  { %v264_v12 = vmul.f32 %v301_v1, %v256_v9  ;;  %v271_v13 = vadd.f32 %v302_v7, %v263_v10 }
 0x19d   :  { %v272_v15 = vadd.f32 %v302_v7, %v264_v12  ;;  %v273_v16 = vadd.f32 %v271_v13, %v123_v11 }
 0x19f   :  { %v274_v17 = vadd.f32 %v272_v15, %v124_v14  ;;  %275 = vst.msk [vmem:[#allocation8] sm:$0xff] %vm75_vm2, %v273_v16 }
 0x1a1   :  { %276 = vst.msk [vmem:[#allocation8 + $0x8] sm:$0xff] %vm75_vm2, %v274_v17 }
 0x1a2   :  { %402 = shalt.err (!%p399_p5)
}
 0x1a3   :  { %288 = dma.vmem_to_hbm [thread:$0]  %s283_s6, 256, %s545_s8, [#allocation4], %s419_s10, %s419_s10, %s420_s11  }
 0x1a4   :  { %415 = dma.done.wait [#allocation4], 256  }
 0x1a5   :  { %416 = vsyncadd [#allocation4], 4294967040 }
 0x1a6   :  { %292 = vsyncpa [#allocation3], 1 }
 0x1a7   :  { %293 = vsyncpa [#allocation6], 1 }
 0x1a8   :  { %294 = vsyncpa [#allocation4], 1 }

</bundles_post_ra>
